<compile_context>
chip_gen: v6e
topology: v6e:2x2x1
jax: 0.10.0
libtpu: 0.0.40
codegen_flags: <defaults>
</compile_context>

<pallas_src>
import functools

import jax
import jax.numpy as jnp
from jax import lax
from jax.experimental import pallas as pl
from jax.experimental.pallas import tpu as pltpu

TASK_REGULARIZATION = 0.0  # GradientLoss.__init__: self.task_regularization = 0


def _round_up(x, m):
    return ((x + m - 1) // m) * m


def _vmem_budget_bytes():
    """Generation-aware VMEM budget: ~48 MiB on v7x (64 MiB phys), ~96 MiB on v5e/v6e."""
    cap = 64 * 1024 * 1024
    try:
        info = pltpu.get_tpu_info()
        cap = int(getattr(info, "vmem_capacity_bytes", cap) or cap)
    except Exception:
        pass
    return (cap * 3) // 4


def _gradient_loss_kernel(x_ref, wgw_ref, b_ref, onehot_ref, gb_ref,
                          obj_ref, task_ref,
                          logits_acc, dlogits_sc, euc_acc, acc_sm,
                          *, batch, num_classes, mxu_dtype):
    p = pl.program_id(0)        # phase: 0 = forward logits, 1 = dW + Euclidean
    d = pl.program_id(1)        # D-tile index
    n_d = pl.num_programs(1)
    inv_batch = 1.0 / batch

    @pl.when((p == 0) & (d == 0))
    def _init():
        logits_acc[...] = jnp.zeros_like(logits_acc)
        euc_acc[...] = jnp.zeros_like(euc_acc)

    @pl.when(p == 0)
    def _forward():
        # Partial logits: contract the shared D axis directly (no w.T copy),
        # operands fed to the MXU in their native (bf16-ready) dtype.
        logits_acc[...] += lax.dot_general(
            x_ref[...], wgw_ref[...],
            dimension_numbers=(((1,), (1,)), ((), ())),
            preferred_element_type=jnp.float32)

    @pl.when((p == 0) & (d == n_d - 1))
    def _softmax_and_bias_grad():
        logits = logits_acc[...] + b_ref[...].astype(jnp.float32)
        # Mask the sublane-padded (fake) classes out of the softmax.
        col = lax.broadcasted_iota(jnp.int32, logits.shape, 1)
        logits = jnp.where(col < num_classes, logits, -1e30)

        m = jnp.max(logits, axis=-1, keepdims=True)
        z = logits - m
        ez = jnp.exp(z)                               # single EUP exp pass
        denom = jnp.sum(ez, axis=-1, keepdims=True)
        logp = z - jnp.log(denom)
        probs = ez / denom                            # reuse exp(z); no 2nd exp

        onehot = onehot_ref[...].astype(jnp.float32)
        task_loss = -jnp.sum(onehot * logp) * inv_batch
        dlogits = (probs - onehot) * inv_batch        # d(mean CE)/d(logits)
        dlogits_sc[...] = dlogits

        db = jnp.sum(dlogits, axis=0, keepdims=True)  # bias gradient [1, C8]
        db_diff = db - gb_ref[...].astype(jnp.float32)
        acc_sm[0] = jnp.sum(db_diff * db_diff)        # bias Euclidean term (un-halved)
        acc_sm[1] = task_loss

    @pl.when(p == 1)
    def _weight_grad_euclidean():
        # dW tile = dlogitsᵀ · x_tile (contract batch axis, no transposes);
        # dlogits is cast DOWN to x's dtype so the MXU runs its native path.
        dw_tile = lax.dot_general(
            dlogits_sc[...].astype(mxu_dtype), x_ref[...],
            dimension_numbers=(((0,), (0,)), ((), ())),
            preferred_element_type=jnp.float32)
        diff = dw_tile - wgw_ref[...].astype(jnp.float32)
        # Lane-reduce only; accumulate into a [C8,1] f32 VMEM vector (no per-step
        # SMEM scalar RMW serial dependency, better summation for large D).
        euc_acc[...] += jnp.sum(diff * diff, axis=-1, keepdims=True)

    @pl.when((p == 1) & (d == n_d - 1))
    def _finalize():
        task_loss = acc_sm[1]
        euclid = 0.5 * (jnp.sum(euc_acc[...]) + acc_sm[0])
        obj_ref[0, 0] = euclid + TASK_REGULARIZATION * task_loss
        task_ref[0, 0] = task_loss


def gradient_loss_forward(x, w, b, labels_onehot, gw_data, gb_data, *,
                          block_d=None, stream_dtype=None):
    """Returns (objective, task_loss) exactly like GradientLoss.forward (Euclidean).

    stream_dtype: optionally stream x/w/gw_data through HBM in a narrower dtype
    (e.g. jnp.bfloat16) — halves the dominant HBM traffic; math stays f32.
    """
    B, D = x.shape
    C = w.shape[0]
    C8 = _round_up(max(C, 1), 8)    # sublane-multiple class pad (NOT 128)

    x_dt = jnp.dtype(stream_dtype) if stream_dtype is not None else jnp.dtype(x.dtype)
    wg_dt = (jnp.dtype(stream_dtype) if stream_dtype is not None
             else jnp.dtype(jnp.result_type(w.dtype, gw_data.dtype)))

    # ---- D tile sized from the per-generation VMEM budget ----
    budget = _vmem_budget_bytes()
    Dp0 = _round_up(max(D, 1), 128)
    fixed = (2 * (B * C8 + 2 * C8) * 4            # small inputs (double-buffered, f32 bound)
             + (2 * B * C8 + C8) * 4              # VMEM scratch
             + (2 << 20))                         # compiler-internal slack
    per_d = 2 * C8 * wg_dt.itemsize + 2 * B * x_dt.itemsize   # bytes per unit of block_d
    if block_d is None:
        bd = (budget - fixed) // max(per_d, 1)
        block_d = int(min(Dp0, max(128, (bd // 128) * 128)))
    else:
        block_d = int(min(Dp0, max(128, _round_up(int(block_d), 128))))
    Dp = _round_up(D, block_d)
    n_d = Dp // block_d

    # ---- pad / cast / stack ----
    x_p = jnp.pad(x.astype(x_dt), ((0, 0), (0, Dp - D)))
    w_p = jnp.pad(w.astype(wg_dt), ((0, C8 - C), (0, Dp - D)))
    gw_p = jnp.pad(gw_data.astype(wg_dt), ((0, C8 - C), (0, Dp - D)))
    # TODO(synk): attack loops over many candidates should pre-stack/pre-pad w/gw
    #             once outside the optimization loop to avoid this copy per call.
    wgw = jnp.stack([w_p, gw_p], axis=0)                                   # [2, C8, Dp]
    b_p = jnp.pad(jnp.asarray(b, jnp.float32).reshape(1, -1), ((0, 0), (0, C8 - C)))
    gb_p = jnp.pad(jnp.asarray(gb_data, jnp.float32).reshape(1, -1), ((0, 0), (0, C8 - C)))
    oh_p = jnp.pad(jnp.asarray(labels_onehot, jnp.float32), ((0, 0), (0, C8 - C)))

    kernel = functools.partial(_gradient_loss_kernel, batch=B, num_classes=C,
                               mxu_dtype=x_dt)

    cost = pl.CostEstimate(
        flops=int(4 * B * C8 * Dp),                    # forward + dW matmuls
        transcendentals=int(B * C8 + B),               # exp + log
        bytes_accessed=int(2 * C8 * Dp * wg_dt.itemsize      # w + gw, streamed once
                           + 2 * B * Dp * x_dt.itemsize      # x, streamed per phase
                           + (3 * B * C8 + 2 * C8) * 4 + 8),
    )

    smem_out = pl.BlockSpec((1, 1), lambda p, d: (0, 0),
                            memory_space=pltpu.MemorySpace.SMEM)

    grid_spec = pltpu.PrefetchScalarGridSpec(
        num_scalar_prefetch=0,
        grid=(2, n_d),
        in_specs=[
            # x: streamed over D tiles in both phases (small: [B, TD]).
            # TODO(synk): for large B keep x fully VMEM-resident across both phases
            #             (saves the second HBM pass; needs a per-gen budget check).
            pl.BlockSpec((B, block_d), lambda p, d: (0, d)),
            # stacked [w; gw_data]: phase selects the slab, D streams the tiles —
            # each [C, D] array crosses HBM exactly once with one shared buffer.
            pl.BlockSpec((pl.Squeezed(), C8, block_d), lambda p, d: (p, 0, d)),
            # bias, one-hot labels, gb_data: tiny, resident for the whole grid.
            pl.BlockSpec((1, C8), lambda p, d: (0, 0)),
            pl.BlockSpec((B, C8), lambda p, d: (0, 0)),
            pl.BlockSpec((1, C8), lambda p, d: (0, 0)),
        ],
        out_specs=(smem_out, smem_out),
        scratch_shapes=[
            pltpu.VMEM((B, C8), jnp.float32),   # logits accumulator
            pltpu.VMEM((B, C8), jnp.float32),   # dlogits
            pltpu.VMEM((C8, 1), jnp.float32),   # per-class-row Euclidean accumulator
            pltpu.SMEM((2,), jnp.float32),      # [bias Euclidean term, task loss]
        ],
    )

    obj, task = pl.pallas_call(
        kernel,
        grid_spec=grid_spec,
        out_shape=(jax.ShapeDtypeStruct((1, 1), jnp.float32),
                   jax.ShapeDtypeStruct((1, 1), jnp.float32)),
        compiler_params=pltpu.CompilerParams(
            # TODO(synk): both grid axes are reductions, so on v7x the second
            #             TensorCore idles; a leading "parallel" axis over
            #             independent candidates (or a core_map D-split with a
            #             cross-core reduce) would use both TCs.
            dimension_semantics=("arbitrary", "arbitrary"),
            vmem_limit_bytes=int(budget)),
        cost_estimate=cost,
    )(x_p, wgw, b_p, oh_p, gb_p)
    return obj[0, 0], task[0, 0]


# -------- plain-JAX reference (for a correctness sanity check) --------
def _reference(x, w, b, onehot, gw_data, gb_data):
    batch = x.shape[0]
    logits = x @ w.T + b
    logp = jax.nn.log_softmax(logits, axis=-1)
    task_loss = -jnp.sum(onehot * logp) / batch
    dlogits = (jnp.exp(logp) - onehot) / batch
    dW = dlogits.T @ x
    db = jnp.sum(dlogits, axis=0, keepdims=True)
    obj = 0.5 * (jnp.sum((dW - gw_data) ** 2) + jnp.sum((db - gb_data) ** 2))
    return obj + TASK_REGULARIZATION * task_loss, task_loss


if __name__ == "__main__":
    B, D, C = 8, 512, 16  # batch, features, classes

    key = jax.random.PRNGKey(0)
    k_x, k_w, k_b, k_lab, k_xt, k_labt = jax.random.split(key, 6)

    # candidate (the reconstruction being optimized) + labels
    x = jax.random.normal(k_x, (B, D), dtype=jnp.float32)
    labels = jax.random.randint(k_lab, (B,), 0, C)
    onehot = jax.nn.one_hot(labels, C, dtype=jnp.float32)

    # deterministic "model" parameters (torch.nn.Linear shapes: W[C,D], b[C])
    w = 0.05 * jax.random.normal(k_w, (C, D), dtype=jnp.float32)
    b = 0.01 * jax.random.normal(k_b, (1, C), dtype=jnp.float32)

    # gradient_data: gradients the "server" observed on some true data (glue, plain JAX)
    x_true = jax.random.normal(k_xt, (B, D), dtype=jnp.float32)
    labels_true = jax.random.randint(k_labt, (B,), 0, C)
    onehot_true = jax.nn.one_hot(labels_true, C, dtype=jnp.float32)
    logits_t = x_true @ w.T + b
    dlogits_t = (jax.nn.softmax(logits_t, axis=-1) - onehot_true) / B
    gw_data = dlogits_t.T @ x_true
    gb_data = jnp.sum(dlogits_t, axis=0, keepdims=True)

    ref_obj, ref_task = _reference(x, w, b, onehot, gw_data, gb_data)

    # 1) default: auto block_d from the VMEM budget (grid collapses to (2,1) here)
    obj1, task1 = gradient_loss_forward(x, w, b, onehot, gw_data, gb_data)
    jax.block_until_ready((obj1, task1))
    assert jnp.allclose(obj1, ref_obj, rtol=1e-4, atol=1e-5), (obj1, ref_obj)
    assert jnp.allclose(task1, ref_task, rtol=1e-4, atol=1e-5), (task1, ref_task)

    # 2) forced small D tile: exercises the multi-D-tile streaming path
    obj2, task2 = gradient_loss_forward(x, w, b, onehot, gw_data, gb_data, block_d=128)
    jax.block_until_ready((obj2, task2))
    assert jnp.allclose(obj2, ref_obj, rtol=1e-4, atol=1e-5), (obj2, ref_obj)
    assert jnp.allclose(task2, ref_task, rtol=1e-4, atol=1e-5), (task2, ref_task)

    # 3) bf16-streamed big operands (native MXU path); compare against a reference
    #    evaluated on the bf16-quantized inputs with a relaxed tolerance.
    obj3, task3 = gradient_loss_forward(x, w, b, onehot, gw_data, gb_data,
                                        block_d=128, stream_dtype=jnp.bfloat16)
    jax.block_until_ready((obj3, task3))
    xq = x.astype(jnp.bfloat16).astype(jnp.float32)
    wq = w.astype(jnp.bfloat16).astype(jnp.float32)
    gwq = gw_data.astype(jnp.bfloat16).astype(jnp.float32)
    ref3_obj, ref3_task = _reference(xq, wq, b, onehot, gwq, gb_data)
    assert jnp.allclose(obj3, ref3_obj, rtol=5e-2, atol=1e-2), (obj3, ref3_obj)
    assert jnp.allclose(task3, ref3_task, rtol=5e-2, atol=1e-3), (task3, ref3_task)

    print("KERNEL_OK")
</pallas_src>

<mosaic_0001>
module attributes {stable_mosaic.version = 11 : i64} {
  func.func @_gradient_loss_kernel(%arg0: i32, %arg1: i32, %arg2: memref<8x512xf32, #tpu.memory_space<vmem>>, %arg3: memref<1x16x512xf32, #tpu.memory_space<vmem>>, %arg4: memref<1x16xf32, #tpu.memory_space<vmem>>, %arg5: memref<8x16xf32, #tpu.memory_space<vmem>>, %arg6: memref<1x16xf32, #tpu.memory_space<vmem>>, %arg7: memref<1x1xf32, #tpu.memory_space<smem>>, %arg8: memref<1x1xf32, #tpu.memory_space<smem>>, %arg9: memref<8x16xf32, #tpu.memory_space<vmem>>, %arg10: memref<8x16xf32, #tpu.memory_space<vmem>>, %arg11: memref<16x1xf32, #tpu.memory_space<vmem>>, %arg12: memref<2xf32, #tpu.memory_space<smem>>) attributes {dimension_semantics = [#tpu.dimension_semantics<arbitrary>, #tpu.dimension_semantics<arbitrary>], iteration_bounds = array<i64: 2, 1>, scalar_prefetch = 0 : i64, scratch_operands = 4 : i64, tpu.core_type = #tpu.core_type<tc>, window_params = [{transform_indices = @transform_0, window_bounds = array<i64: 8, 512>}, {transform_indices = @transform_1, window_bounds = array<i64: 1, 16, 512>}, {pipeline_mode = #tpu.pipeline_mode<synchronous>, transform_indices = @transform_2, window_bounds = array<i64: 1, 16>}, {pipeline_mode = #tpu.pipeline_mode<synchronous>, transform_indices = @transform_3, window_bounds = array<i64: 8, 16>}, {pipeline_mode = #tpu.pipeline_mode<synchronous>, transform_indices = @transform_4, window_bounds = array<i64: 1, 16>}, {transform_indices = @transform_5, window_bounds = array<i64: 1, 1>}, {transform_indices = @transform_6, window_bounds = array<i64: 1, 1>}]} {
    %c0_i32 = arith.constant 0 : i32
    %0 = arith.cmpi eq, %arg0, %c0_i32 : i32
    %c0_i32_0 = arith.constant 0 : i32
    %1 = arith.cmpi eq, %arg1, %c0_i32_0 : i32
    %2 = arith.andi %0, %1 : i1
    %3 = arith.extui %2 : i1 to i32
    %c0_i32_1 = arith.constant 0 : i32
    %4 = arith.cmpi ne, %3, %c0_i32_1 : i32
    scf.if %4 {
      %cst = arith.constant 0.000000e+00 : f32
      %21 = vector.broadcast %cst : f32 to vector<8x16xf32>
      %c0 = arith.constant 0 : index
      %c0_11 = arith.constant 0 : index
      %22 = vector.load %arg9[%c0, %c0_11] : memref<8x16xf32, #tpu.memory_space<vmem>>, vector<8x16xf32>
      tpu.vector_store %arg9[%c0, %c0_11], %21 {strides = array<i32>} : memref<8x16xf32, #tpu.memory_space<vmem>>, vector<8x16xf32>,
      %cst_12 = arith.constant 0.000000e+00 : f32
      %23 = vector.broadcast %cst_12 : f32 to vector<16x1xf32>
      %c0_13 = arith.constant 0 : index
      %c0_14 = arith.constant 0 : index
      %24 = vector.load %arg11[%c0_13, %c0_14] : memref<16x1xf32, #tpu.memory_space<vmem>>, vector<16x1xf32>
      tpu.vector_store %arg11[%c0_13, %c0_14], %23 {strides = array<i32>} : memref<16x1xf32, #tpu.memory_space<vmem>>, vector<16x1xf32>,
    } else {
    }
    %c0_i32_2 = arith.constant 0 : i32
    %5 = arith.cmpi eq, %arg0, %c0_i32_2 : i32
    %6 = arith.extui %5 : i1 to i32
    %c0_i32_3 = arith.constant 0 : i32
    %7 = arith.cmpi ne, %6, %c0_i32_3 : i32
    scf.if %7 {
      %c0 = arith.constant 0 : index
      %c0_11 = arith.constant 0 : index
      %21 = vector.load %arg9[%c0, %c0_11] : memref<8x16xf32, #tpu.memory_space<vmem>>, vector<8x16xf32>
      %c0_12 = arith.constant 0 : index
      %c0_13 = arith.constant 0 : index
      %22 = vector.load %arg2[%c0_12, %c0_13] : memref<8x512xf32, #tpu.memory_space<vmem>>, vector<8x512xf32>
      %c0_14 = arith.constant 0 : index
      %c0_15 = arith.constant 0 : index
      %c0_16 = arith.constant 0 : index
      %23 = vector.load %arg3[%c0_14, %c0_15, %c0_16] : memref<1x16x512xf32, #tpu.memory_space<vmem>>, vector<1x16x512xf32>
      %24 = vector.shape_cast %23 : vector<1x16x512xf32> to vector<16x512xf32>
      %cst = arith.constant dense<0.000000e+00> : vector<8x16xf32>
      %25 = tpu.matmul %22, %24, %cst {dimension_numbers = #tpu.dot_dimension_numbers<[1], [1], [0], [0], [0, 0, 1, 0], [], []>} : vector<8x512xf32>, vector<16x512xf32>, vector<8x16xf32> -> vector<8x16xf32>
      %26 = arith.addf %21, %25 : vector<8x16xf32>
      %c0_17 = arith.constant 0 : index
      %c0_18 = arith.constant 0 : index
      %27 = vector.load %arg9[%c0_17, %c0_18] : memref<8x16xf32, #tpu.memory_space<vmem>>, vector<8x16xf32>
      tpu.vector_store %arg9[%c0_17, %c0_18], %26 {strides = array<i32>} : memref<8x16xf32, #tpu.memory_space<vmem>>, vector<8x16xf32>,
    } else {
    }
    %c0_i32_4 = arith.constant 0 : i32
    %8 = arith.cmpi eq, %arg0, %c0_i32_4 : i32
    %c0_i32_5 = arith.constant 0 : i32
    %9 = arith.cmpi eq, %arg1, %c0_i32_5 : i32
    %10 = arith.andi %8, %9 : i1
    %11 = arith.extui %10 : i1 to i32
    %c0_i32_6 = arith.constant 0 : i32
    %12 = arith.cmpi ne, %11, %c0_i32_6 : i32
    scf.if %12 {
      %c0 = arith.constant 0 : index
      %c0_11 = arith.constant 0 : index
      %21 = vector.load %arg9[%c0, %c0_11] : memref<8x16xf32, #tpu.memory_space<vmem>>, vector<8x16xf32>
      %c0_12 = arith.constant 0 : index
      %c0_13 = arith.constant 0 : index
      %22 = vector.load %arg4[%c0_12, %c0_13] : memref<1x16xf32, #tpu.memory_space<vmem>>, vector<1x16xf32>
      %23 = vector.broadcast %22 : vector<1x16xf32> to vector<8x16xf32>
      %24 = arith.addf %21, %23 : vector<8x16xf32>
      %25 = tpu.iota {dimensions = array<i32: 1>} : vector<8x16xi32>
      %c16_i32 = arith.constant 16 : i32
      %26 = vector.broadcast %c16_i32 : i32 to vector<8x16xi32>
      %27 = arith.cmpi slt, %25, %26 : vector<8x16xi32>
      %cst = arith.constant -1.000000e+30 : f32
      %28 = vector.broadcast %cst : f32 to vector<8x16xf32>
      %29 = arith.select %27, %24, %28 : vector<8x16xi1>, vector<8x16xf32>
      %cst_14 = arith.constant dense<0xFF800000> : vector<8xf32>
      %30 = vector.multi_reduction <maximumf>, %29, %cst_14 [1] : vector<8x16xf32> to vector<8xf32>
      %31 = vector.shape_cast %30 : vector<8xf32> to vector<8x1xf32>
      %32 = vector.broadcast %31 : vector<8x1xf32> to vector<8x16xf32>
      %33 = arith.subf %29, %32 : vector<8x16xf32>
      %34 = math.exp %33 : vector<8x16xf32>
      %cst_15 = arith.constant dense<0.000000e+00> : vector<8xf32>
      %35 = vector.multi_reduction <add>, %34, %cst_15 [1] : vector<8x16xf32> to vector<8xf32>
      %36 = vector.shape_cast %35 : vector<8xf32> to vector<8x1xf32>
      %37 = math.log %36 : vector<8x1xf32>
      %38 = vector.broadcast %37 : vector<8x1xf32> to vector<8x16xf32>
      %39 = arith.subf %33, %38 : vector<8x16xf32>
      %40 = vector.broadcast %36 : vector<8x1xf32> to vector<8x16xf32>
      %41 = arith.divf %34, %40 : vector<8x16xf32>
      %c0_16 = arith.constant 0 : index
      %c0_17 = arith.constant 0 : index
      %42 = vector.load %arg5[%c0_16, %c0_17] : memref<8x16xf32, #tpu.memory_space<vmem>>, vector<8x16xf32>
      %43 = arith.mulf %42, %39 : vector<8x16xf32>
      %44 = vector.shape_cast %43 : vector<8x16xf32> to vector<1x8x16xf32>
      %cst_18 = arith.constant dense<0.000000e+00> : vector<1xf32>
      %45 = vector.multi_reduction <add>, %44, %cst_18 [1, 2] : vector<1x8x16xf32> to vector<1xf32>
      %46 = vector.shape_cast %45 : vector<1xf32> to vector<1x1x1xf32>
      %47 = vector.extract %46[0, 0, 0] : f32 from vector<1x1x1xf32>
      %cst_19 = arith.constant 0.000000e+00 : f32
      %48 = arith.subf %cst_19, %47 : f32
      %cst_20 = arith.constant 1.250000e-01 : f32
      %49 = arith.mulf %48, %cst_20 : f32
      %50 = arith.subf %41, %42 : vector<8x16xf32>
      %cst_21 = arith.constant 1.250000e-01 : f32
      %51 = vector.broadcast %cst_21 : f32 to vector<8x16xf32>
      %52 = arith.mulf %50, %51 : vector<8x16xf32>
      %c0_22 = arith.constant 0 : index
      %c0_23 = arith.constant 0 : index
      %53 = vector.load %arg10[%c0_22, %c0_23] : memref<8x16xf32, #tpu.memory_space<vmem>>, vector<8x16xf32>
      tpu.vector_store %arg10[%c0_22, %c0_23], %52 {strides = array<i32>} : memref<8x16xf32, #tpu.memory_space<vmem>>, vector<8x16xf32>,
      %cst_24 = arith.constant dense<0.000000e+00> : vector<16xf32>
      %54 = vector.multi_reduction <add>, %52, %cst_24 [0] : vector<8x16xf32> to vector<16xf32>
      %55 = vector.shape_cast %54 : vector<16xf32> to vector<1x16xf32>
      %c0_25 = arith.constant 0 : index
      %c0_26 = arith.constant 0 : index
      %56 = vector.load %arg6[%c0_25, %c0_26] : memref<1x16xf32, #tpu.memory_space<vmem>>, vector<1x16xf32>
      %57 = arith.subf %55, %56 : vector<1x16xf32>
      %58 = arith.mulf %57, %57 : vector<1x16xf32>
      %59 = vector.shape_cast %58 : vector<1x16xf32> to vector<1x1x16xf32>
      %cst_27 = arith.constant dense<0.000000e+00> : vector<1xf32>
      %60 = vector.multi_reduction <add>, %59, %cst_27 [1, 2] : vector<1x1x16xf32> to vector<1xf32>
      %61 = vector.shape_cast %60 : vector<1xf32> to vector<1x1x1xf32>
      %62 = vector.extract %61[0, 0, 0] : f32 from vector<1x1x1xf32>
      %c0_28 = arith.constant 0 : index
      %63 = memref.load %arg12[%c0_28] : memref<2xf32, #tpu.memory_space<smem>>
      memref.store %62, %arg12[%c0_28] : memref<2xf32, #tpu.memory_space<smem>>
      %c1 = arith.constant 1 : index
      %64 = memref.load %arg12[%c1] : memref<2xf32, #tpu.memory_space<smem>>
      memref.store %49, %arg12[%c1] : memref<2xf32, #tpu.memory_space<smem>>
    } else {
    }
    %c1_i32 = arith.constant 1 : i32
    %13 = arith.cmpi eq, %arg0, %c1_i32 : i32
    %14 = arith.extui %13 : i1 to i32
    %c0_i32_7 = arith.constant 0 : i32
    %15 = arith.cmpi ne, %14, %c0_i32_7 : i32
    scf.if %15 {
      %c0 = arith.constant 0 : index
      %c0_11 = arith.constant 0 : index
      %21 = vector.load %arg10[%c0, %c0_11] : memref<8x16xf32, #tpu.memory_space<vmem>>, vector<8x16xf32>
      %c0_12 = arith.constant 0 : index
      %c0_13 = arith.constant 0 : index
      %22 = vector.load %arg2[%c0_12, %c0_13] : memref<8x512xf32, #tpu.memory_space<vmem>>, vector<8x512xf32>
      %cst = arith.constant dense<0.000000e+00> : vector<16x512xf32>
      %23 = tpu.matmul %21, %22, %cst {dimension_numbers = #tpu.dot_dimension_numbers<[0], [0], [1], [1], [0, 1, 1, 1], [], []>} : vector<8x16xf32>, vector<8x512xf32>, vector<16x512xf32> -> vector<16x512xf32>
      %c0_14 = arith.constant 0 : index
      %c0_15 = arith.constant 0 : index
      %c0_16 = arith.constant 0 : index
      %24 = vector.load %arg3[%c0_14, %c0_15, %c0_16] : memref<1x16x512xf32, #tpu.memory_space<vmem>>, vector<1x16x512xf32>
      %25 = vector.shape_cast %24 : vector<1x16x512xf32> to vector<16x512xf32>
      %26 = arith.subf %23, %25 : vector<16x512xf32>
      %c0_17 = arith.constant 0 : index
      %c0_18 = arith.constant 0 : index
      %27 = vector.load %arg11[%c0_17, %c0_18] : memref<16x1xf32, #tpu.memory_space<vmem>>, vector<16x1xf32>
      %28 = arith.mulf %26, %26 : vector<16x512xf32>
      %cst_19 = arith.constant dense<0.000000e+00> : vector<16xf32>
      %29 = vector.multi_reduction <add>, %28, %cst_19 [1] : vector<16x512xf32> to vector<16xf32>
      %30 = vector.shape_cast %29 : vector<16xf32> to vector<16x1xf32>
      %31 = arith.addf %27, %30 : vector<16x1xf32>
      %c0_20 = arith.constant 0 : index
      %c0_21 = arith.constant 0 : index
      %32 = vector.load %arg11[%c0_20, %c0_21] : memref<16x1xf32, #tpu.memory_space<vmem>>, vector<16x1xf32>
      tpu.vector_store %arg11[%c0_20, %c0_21], %31 {strides = array<i32>} : memref<16x1xf32, #tpu.memory_space<vmem>>, vector<16x1xf32>,
    } else {
    }
    %c1_i32_8 = arith.constant 1 : i32
    %16 = arith.cmpi eq, %arg0, %c1_i32_8 : i32
    %c0_i32_9 = arith.constant 0 : i32
    %17 = arith.cmpi eq, %arg1, %c0_i32_9 : i32
    %18 = arith.andi %16, %17 : i1
    %19 = arith.extui %18 : i1 to i32
    %c0_i32_10 = arith.constant 0 : i32
    %20 = arith.cmpi ne, %19, %c0_i32_10 : i32
    scf.if %20 {
      %c1 = arith.constant 1 : index
      %21 = memref.load %arg12[%c1] : memref<2xf32, #tpu.memory_space<smem>>
      %c0 = arith.constant 0 : index
      %c0_11 = arith.constant 0 : index
      %22 = vector.load %arg11[%c0, %c0_11] : memref<16x1xf32, #tpu.memory_space<vmem>>, vector<16x1xf32>
      %23 = vector.shape_cast %22 : vector<16x1xf32> to vector<1x16x1xf32>
      %cst = arith.constant dense<0.000000e+00> : vector<1xf32>
      %24 = vector.multi_reduction <add>, %23, %cst [1, 2] : vector<1x16x1xf32> to vector<1xf32>
      %25 = vector.shape_cast %24 : vector<1xf32> to vector<1x1x1xf32>
      %26 = vector.extract %25[0, 0, 0] : f32 from vector<1x1x1xf32>
      %c0_12 = arith.constant 0 : index
      %27 = memref.load %arg12[%c0_12] : memref<2xf32, #tpu.memory_space<smem>>
      %28 = arith.addf %26, %27 : f32
      %cst_13 = arith.constant 5.000000e-01 : f32
      %29 = arith.mulf %cst_13, %28 : f32
      %cst_14 = arith.constant 0.000000e+00 : f32
      %30 = arith.mulf %cst_14, %21 : f32
      %31 = arith.addf %29, %30 : f32
      %c0_15 = arith.constant 0 : index
      %c0_16 = arith.constant 0 : index
      %32 = memref.load %arg7[%c0_15, %c0_16] : memref<1x1xf32, #tpu.memory_space<smem>>
      memref.store %31, %arg7[%c0_15, %c0_16] : memref<1x1xf32, #tpu.memory_space<smem>>
      %c0_17 = arith.constant 0 : index
      %c0_18 = arith.constant 0 : index
      %33 = memref.load %arg8[%c0_17, %c0_18] : memref<1x1xf32, #tpu.memory_space<smem>>
      memref.store %21, %arg8[%c0_17, %c0_18] : memref<1x1xf32, #tpu.memory_space<smem>>
    } else {
    }
    return
  }
  func.func @transform_0(%arg0: i32, %arg1: i32) -> (i32, i32) {
    %c0_i32 = arith.constant 0 : i32
    %c0_i32_0 = arith.constant 0 : i32
    return %c0_i32, %arg1 : i32, i32
  }
  func.func @transform_1(%arg0: i32, %arg1: i32) -> (i32, i32, i32) {
    %c0_i32 = arith.constant 0 : i32
    %c0_i32_0 = arith.constant 0 : i32
    return %arg0, %c0_i32, %arg1 : i32, i32, i32
  }
  func.func @transform_2(%arg0: i32, %arg1: i32) -> (i32, i32) {
    %c0_i32 = arith.constant 0 : i32
    %c0_i32_0 = arith.constant 0 : i32
    %c0_i32_1 = arith.constant 0 : i32
    return %c0_i32, %c0_i32_0 : i32, i32
  }
  func.func @transform_3(%arg0: i32, %arg1: i32) -> (i32, i32) {
    %c0_i32 = arith.constant 0 : i32
    %c0_i32_0 = arith.constant 0 : i32
    %c0_i32_1 = arith.constant 0 : i32
    return %c0_i32, %c0_i32_0 : i32, i32
  }
  func.func @transform_4(%arg0: i32, %arg1: i32) -> (i32, i32) {
    %c0_i32 = arith.constant 0 : i32
    %c0_i32_0 = arith.constant 0 : i32
    %c0_i32_1 = arith.constant 0 : i32
    return %c0_i32, %c0_i32_0 : i32, i32
  }
  func.func @transform_5(%arg0: i32, %arg1: i32) -> (i32, i32) {
    %c0_i32 = arith.constant 0 : i32
    %c0_i32_0 = arith.constant 0 : i32
    %c0_i32_1 = arith.constant 0 : i32
    return %c0_i32, %c0_i32_0 : i32, i32
  }
  func.func @transform_6(%arg0: i32, %arg1: i32) -> (i32, i32) {
    %c0_i32 = arith.constant 0 : i32
    %c0_i32_0 = arith.constant 0 : i32
    %c0_i32_1 = arith.constant 0 : i32
    return %c0_i32, %c0_i32_0 : i32, i32
  }
}

</mosaic_0001>

<bundles_post_ra>
// kernel: tpu_custom_call.1
= control target key start
LH: loop header
LB: loop body
LE: loop exit
PB: predicated region body
PF: predicated region fallthrough
CT: control target
= control target key end

     0   :  { %s1462_s0 = inlined_call_operand.hbm [shape: f32[8,512], index: 0, kind: input, shape index: {}]   ;;  %s1463_s1 = inlined_call_operand.hbm [shape: f32[2,16,512], index: 1, kind: input, shape index: {}]   ;;  %s1464_s2 = inlined_call_operand.vmem [shape: f32[1,16], index: 2, kind: input, shape index: {}]   ;;  %s1465_s3 = inlined_call_operand.hbm [shape: f32[8,16], index: 3, kind: input, shape index: {}]   ;;  %s1466_s4 = inlined_call_operand.vmem [shape: f32[1,16], index: 4, kind: input, shape index: {}]   ;;  %s1467_s5 = inlined_call_operand.hbm [shape: f32[1,1], index: 5, kind: output, shape index: {0}]   ;;  %s1468_s6 = inlined_call_operand.hbm [shape: f32[1,1], index: 6, kind: output, shape index: {1}]  }
   0x1   :  { %1472 = sst [smem:[#allocation20_spill]] %s1462_s0 }
   0x2   :  { %12 = vsyncpa [#allocation7], 0 }
   0x3   :  { %13 = vsyncpa [#allocation10], 0 }
   0x4   :  { %15 = vsyncpa [#allocation10 + $0x1], 0 }
   0x5   :  { %16 = vsyncpa [#allocation8], 0 }
   0x6   :  { %17 = vsyncpa [#allocation14], 0  ;;  %s1282_s21 = smov 0   ;;  %s1284_s22 = smov 0  }
   0x7   :  { %s1286_s23 = smov 0   ;;  %s1288_s24 = smov 0  }
   0x8   :  { %s1290_s25 = smov 0   ;;  %s1292_s26 = smov 0  }
   0x9 LB: > { %s1311_s27 = sadd.s32 4294967295, %s1236_s26   ;;  %s70_s28 = sadd.s32 1, %s1224_s23  ;;  %s1236_s26 = sphi %s1292_s26, %s23_s26   ;;  %s1232_s25 = sphi %s1290_s25, %s1488_s25   ;;  %s1228_s24 = sphi %s1288_s24, %s1487_s24   ;;  %s1224_s23 = sphi %s1286_s23, %s1486_s23   ;;  %s1220_s22 = sphi %s1284_s22, %s1485_s22   ;;  %s1216_s21 = sphi %s1282_s21, %s1484_s21  }
   0xa   : > { %p77_p0 = scmp.ne.s32.totalorder %s1224_s23, %s1220_s22  ;;  %p78_p1 = scmp.eq.s32.totalorder %s1236_s26, 0 }
   0xb   : > { %p83_p2 = scmp.ne.s32.totalorder %s1220_s22, %s1216_s21  ;;  %p1469_p3 = scmp.eq.s32.totalorder %s1311_s27, 0 }
   0xc   : > { %p79_p4 = por %p78_p1, %p77_p0  ;;  %p934_p5 = scmp.ge.s32.totalorder %s1236_s26, 1 }
   0xd   : > { %p1322_p6 = por %p1469_p3, %p83_p2  ;;  %p199_p7 = scmp.lt.s32.totalorder %s1236_s26, 3 }
   0xe   : > { %s1238_s7 = smov [#allocation11]   ;;  %p1001_p10 = scmp.lt.s32.totalorder %s1236_s26, 2 }
   0xf   : > { %s1473_s29 = scalar_select %p1322_p6, 1, 0 }
  0x10   : > { %p1327_p8 = pnand %p934_p5, %p199_p7  ;;  %s229_s8 = sshll.u32 %s1238_s7, 4  ;;  %s230_s8 = int_to_ptr.vmem [resolvable:$true] %s229_s8 }
  0x11   : > { %p1340_p12 = pnand %p1001_p10, %p79_p4  ;;  %s1239_s11 = smov [#allocation6]  }
  0x12   : > { %s1474_s30 = scalar_select %p1327_p8, 1, 0 }
  0x13   : > { %p988_p9 = pneg %p1327_p8  ;;  %s215_s12 = sshll.u32 %s1239_s11, 4  ;;  %s216_s12 = int_to_ptr.vmem [resolvable:$true] %s215_s12 }
  0x14   : > { %s1081_s13 = scalar_lea.vmem %s230_s8, 128  ;;  %p1089_p5 = scmp.lt.s32.totalorder %s230_s8, %s230_s8 }
  0x15   : > { %p1336_p11 = pnand %p988_p9, %p1469_p3  ;;  %p1082_p0 = scmp.ne.s32.totalorder %s230_s8, %s1081_s13 }
  0x16   : > { %p1090_p7 = scmp.lt.s32.totalorder %s1081_s13, %s1081_s13 }
  0x17   : > { %p1072_p13 = pneg %p1336_p11 }
  0x18   : > { %p1091_p9 = por %p1090_p7, %p1089_p5 }
  0x19   : > { %p1084_p1 = pnand %p1082_p0, %p1072_p13 }
  0x1b   : > { %p1085_p2 = pneg %p1084_p1 }
  0x1d   : > { %p1092_p3 = pnand %p1091_p9, %p1085_p2 }
  0x1f   : > { %1095 = shalt.err (!%p1092_p3)
}
  0x20   : > { %994 = dma.hbm_to_vmem [thread:$0]  (!%p1336_p11), %s1465_s3, 128, %s230_s8, [#allocation10]  }
  0x21   : > { %s1107_s16 = scalar_lea.vmem %s216_s12, 512  ;;  %p1115_p1 = scmp.lt.s32.totalorder %s216_s12, %s216_s12 }
  0x22   : > { %p1108_p4 = scmp.ne.s32.totalorder %s216_s12, %s1107_s16  ;;  %p1116_p6 = scmp.lt.s32.totalorder %s1107_s16, %s1107_s16 }
  0x24   : > { %p1110_p10 = pnand %p1108_p4, %p1072_p13  ;;  %p1117_p8 = por %p1116_p6, %p1115_p1 }
  0x26   : > { %p1111_p0 = pneg %p1110_p10 }
  0x28   : > { %p1118_p5 = pnand %p1117_p8, %p1111_p0 }
  0x2a   : > { %1121 = shalt.err (!%p1118_p5)
}
  0x2b   : > { %s1477_s0 = sld [smem:[#allocation20_spill]]  ;;  %s243_s19 = sand.u32 1, %s1236_s26  }
  0x2c   : > { %s35_s20 = sadd.s32 1, %s1232_s25  ;;  %s245_s21 = sand.u32 1, %s1224_s23  }
  0x2d   : > { %p37_p3 = scmp.ge.s32.totalorder %s35_s20, 2  ;;  %s938_s7 = sshll.u32 %s245_s21, 6 }
  0x2e   : > { %s961_s8 = sshll.u32 %s1232_s25, 10  ;;  %s247_s15 = scalar_lea.vmem [#allocation9], %s938_s7 }
  0x2f   : > { %s1490_s20 = smov (%p37_p3, %s35_s20), 0  ;;  %s255_s13 = scalar_lea.hbm %s1463_s1, %s961_s8 }
  0x30   : > { %s65_s14 = ssub.s32 %s1232_s25, %s1490_s20  ;;  %s256_s16 = sshll.u32 %s247_s15, 4  ;;  %s257_s16 = int_to_ptr.vmem [resolvable:$true] %s256_s16 }
  0x31   : > { %991 = dma.hbm_to_vmem [thread:$0]  (!%p1336_p11), %s1477_s0, 512, %s216_s12, [#allocation7]  }
  0x32   : > { %p68_p6 = scmp.eq.s32.totalorder %s65_s14, 0  ;;  %s244_s17 = scalar_lea.sflag [#allocation10], %s243_s19 }
  0x33   : > { %p1124_p8 = pneg %p1340_p12  ;;  %s1135_s18 = scalar_lea.vmem %s257_s16, 1024 }
  0x34   : > { %s1376_s12 = scalar_select %p68_p6, %s1224_s23, %s70_s28  }
  0x35   : > { %p1136_p11 = scmp.ne.s32.totalorder %s257_s16, %s1135_s18  ;;  %s1240_s21 = smov [#allocation9]  }
  0x36   : > { %s1140_s0 = sshll.u32 %s1240_s21, 4  ;;  %s1141_s0 = int_to_ptr.vmem [resolvable:$false] %s1140_s0 }
  0x37   : > { %p1138_p13 = pnand %p1136_p11, %p1124_p8  ;;  %s1142_s9 = scalar_lea.vmem %s1141_s0, 2048 }
  0x38   : > { %p1143_p7 = scmp.lt.s32.totalorder %s257_s16, %s1141_s0  ;;  %p1144_p9 = scmp.lt.s32.totalorder %s1142_s9, %s1135_s18 }
  0x39   : > { %p1139_p2 = pneg %p1138_p13 }
  0x3a   : > { %p1145_p4 = por %p1144_p9, %p1143_p7 }
  0x3c   : > { %p1146_p10 = pnand %p1145_p4, %p1139_p2 }
  0x3e   : > { %1149 = shalt.err (!%p1146_p10)
}
  0x3f   : > { %s1241_s7 = smov 512   ;;  %s1242_s28 = smov 32  }
  0x40   : > { %998 = dma.hbm_to_vmem [thread:$0]  (!%p1340_p12), %s255_s13, 1024, %s257_s16, %s244_s17, %s1241_s7, %s1241_s7, %s1242_s28  }
  0x41   : > { %p1478_p0 = scmp.ne.s32.totalorder %s1474_s30, 0 }
  0x42   : > { %p1479_p1 = scmp.eq.s32.totalorder (!%p1478_p0), %s1311_s27, 0 }
  0x43   : > { %268 = sbr.rel (%p1478_p0) target bundleno = 1557 (0x615), region = 40 }
  0x48   : > { %1195 = dma.done.wait (%p1479_p1), [#allocation7], 512   ;;  %p1480_p5 = pmov %p1479_p1 }
  0x49   : > { %s274_s0 = sand.u32 1, %s1311_s27   ;;  %s276_s19 = sand.u32 1, %s1220_s22  }
  0x4a   : > { %1197 = vsyncadd (%p1480_p5), [#allocation7], 4294966784  ;;  %s943_s8 = sshll.u32 %s276_s19, 6  ;;  %s275_s11 = scalar_lea.sflag [#allocation10], %s274_s0 }
  0x4b   : > { %s1390_s14 = scalar_lea.vmem [#allocation9], %s943_s8  ;;  %p1481_p3 = scmp.ne.s32.totalorder %s1473_s29, 0 }
  0x4d   : > { %1199 = dma.done.wait (%p1481_p3), %s275_s11, 1024  }
  0x4e   : > { %1201 = vsyncadd (%p1481_p3), %s275_s11, 4294966272  ;;  %p1482_p12 = pmov %p1479_p1 }
  0x4f   : > { %p1483_p6 = pmov %p1479_p1 }
  0x50   : > { %1203 = dma.done.wait (%p1482_p12), [#allocation10], 128  }
  0x51   : > { %1205 = vsyncadd (%p1483_p6), [#allocation10], 4294967168  ;;  %p308_p8 = scmp.eq.s32.totalorder %s1228_s24, 0 }
  0x52   : > { %vm314_vm0 = vcmask (%p308_p8), 130048   ;;  %vm316_vm1 = vcmask (%p308_p8), 7168   ;;  %v1243_v0 = vmov (%p308_p8), 0.0  }
  0x53   : > { %313 = sbr.rel (!%p308_p8) target bundleno = 88 (0x58), region = 56  ;;  %315 = vst.msk [vmem:[#allocation2] sm:$0xff] (%p308_p8), %vm314_vm0, %v1243_v0 }
  0x54   : > { %317 = vst.msk [vmem:[#allocation4] sm:$0xff] (%p308_p8), %vm316_vm1, %v1243_v0  ;;  %318 = vst.msk [vmem:[#allocation4 + $0x8] sm:$0xff] (%p308_p8), %vm316_vm1, %v1243_v0 }
  0x58 PF: > { %p946_p11 = scmp.ne.s32.totalorder %s1228_s24, 0 }
  0x5a   : > { %321 = sbr.rel (%p946_p11) target bundleno = 302 (0x12e), region = 60 }
  0x5f   : > { %v332_v1 = vld [vmem:[%s1390_s14 + $0x28] sm:$0xff]  ;;  %v334_v2 = vld [vmem:[%s1390_s14 + $0x38] sm:$0xff]  ;;  %v331_v3 = vld [vmem:[%s1390_s14 + $0x20] sm:$0xff]  ;;  %vm476_vm2 = vcmask 130048  }
  0x60   : > { %363 = vmatprep.subr.mxu0 %v332_v1  ;;  %433 = vmatprep.subr.mxu1 %v334_v2  ;;  %v333_v4 = vld [vmem:[%s1390_s14 + $0x30] sm:$0xff]  ;;  %v328_v5 = vld [vmem:[%s1390_s14 + $0x8] sm:$0xff]  ;;  %v330_v6 = vld [vmem:[%s1390_s14 + $0x18] sm:$0xff] }
  0x61   : > { %364 = vmatpush1.xpose.msra.mxu0 %v331_v3  ;;  %434 = vmatpush1.xpose.msra.mxu1 %v333_v4  ;;  %v324_v7 = vld [vmem:[#allocation6 + $0x8] sm:$0xff]  ;;  %v327_v8 = vld [vmem:[%s1390_s14] sm:$0xff]  ;;  %v329_v9 = vld [vmem:[%s1390_s14 + $0x10] sm:$0xff] }
  0x62   : > { %365 = vmatprep.subr.mxu0 %v328_v5  ;;  %435 = vmatprep.subr.mxu1 %v330_v6  ;;  %v326_v10 = vld [vmem:[#allocation6 + $0x18] sm:$0xff]  ;;  %v323_v11 = vld [vmem:[#allocation6] sm:$0xff]  ;;  %v325_v12 = vld [vmem:[#allocation6 + $0x10] sm:$0xff] }
  0x63   : > { %399 = vmatprep.mubr.f32.mxu0 %v324_v7  ;;  %469 = vmatprep.mubr.f32.mxu1 %v326_v10  ;;  %v322_v14 = vld [vmem:[#allocation2] sm:$0xff] }
  0x65   : > { %366 = vmatpush1.xpose.msra.mxu0 %v327_v8  ;;  %436 = vmatpush1.xpose.msra.mxu1 %v329_v9 }
  0x68   : > { %400 = vmatmul.mubr.f32.vlgmr.msra.gmra.mxu0 %v323_v11  ;;  %470 = vmatmul.mubr.f32.vlgmr.msra.gmra.mxu1 %v325_v12 }
 0x128   : > { %v401_v13 = vpop.f32.mrf.mxu0  ;;  %v471_v15 = vpop.f32.mrf.mxu1 }
 0x129   : > { %v472_v16 = vadd.f32 %v471_v15, %v401_v13 }
 0x12a   : > { %v403_v17 = vpop.f32.mrf.mxu0  ;;  %v473_v18 = vpop.f32.mrf.mxu1 }
 0x12b   : > { %v475_v19 = vadd.f32 %v472_v16, %v322_v14 }
 0x12d   : > { %477 = vst.msk [vmem:[#allocation2] sm:$0xff] %vm476_vm2, %v475_v19 }
 0x12e PF: > { %479 = sbr.rel (!%p308_p8) target bundleno = 848 (0x350), region = 64  ;;  %v947_v21 = vld [vmem:[%s1464_s2] ss:$0 sm:$0xff] (%p308_p8)  ;;  %v489_v22 = vlaneseq (%p308_p8)  ;;  %vm493_vm3 = vcmask (%p308_p8), 130048   ;;  %vm535_vm5 = vcmask (%p308_p8), 122880  }
 0x12f   : > { %v508_v36 = vld [vmem:[#allocation11] sm:$0xff] (%p308_p8) }
 0x130   : > { %v490_v24 = vand.u32 (%p308_p8), 127, %v489_v22  ;;  %v532_v49 = vld [vmem:[%s1466_s4] sm:$0x1] (%p308_p8) }
 0x132   : > { %vm491_vm4 = vcmp.lt.s32.totalorder (%p308_p8), %v490_v24, 16 }
 0x134   : > { %v480_v20 = vld [vmem:[#allocation2] sm:$0xff] }
 0x135   : > { %v488_v23 = vadd.f32 %v947_v21, %v480_v20 }
 0x137   : > { %v492_v25 = vsel %vm491_vm4, %v488_v23, -1e+30 }
 0x138   : > { %v494_v26 = vsel %vm493_vm3, %v492_v25, -inf }
 0x139   : > { %495 = vmax.xlane.f32.xlu0 %v494_v26 }
 0x1c2   : > { %v496_v27 = vpop.xlane.xlu0 %495 }
 0x1c3   : > { %v497_v28 = vsub.f32 %v492_v25, %v496_v27 }
 0x1c5   : > { %v498_v29 = vmul.f32 1.442695, %v497_v28 }
 0x1c7   : > { %1064 = vpow2.f32 %v498_v29 }
 0x1d4   : > { %v1065_v30 = vpop.eup %1064 }
 0x1d5   : > { %v500_v31 = vsel %vm493_vm3, %v1065_v30, 0.0 }
 0x1d6   : > { %501 = vadd.xlane.f32.xlu0 %v500_v31 }
 0x25f   : > { %v502_v32 = vpop.xlane.xlu0 %501 }
 0x260   : > { %1066 = vlog2.f32 %v502_v32 }
 0x261   : > { %1068 = vrcp.f32 %v502_v32 }
 0x26d   : > { %v1067_v33 = vpop.eup %1066 }
 0x26e   : > { %v1069_v34 = vpop.eup %1068  ;;  %v504_v35 = vmul.f32 0.6931472, %v1067_v33 }
 0x26f   : > { %v507_v37 = vmul.f32 %v1069_v34, %v1065_v30 }
 0x270   : > { %v505_v38 = vsub.f32 %v497_v28, %v504_v35 }
 0x271   : > { %v522_v39 = vsub.f32 %v507_v37, %v508_v36 }
 0x272   : > { %v509_v40 = vmul.f32 %v508_v36, %v505_v38 }
 0x273   : > { %v523_v41 = vmul.f32 0.125, %v522_v39 }
 0x274   : > { %v510_v42 = vsel %vm493_vm3, %v509_v40, 0.0 }
 0x275   : > { %524 = vst.msk [vmem:[#allocation3] sm:$0xff] %vm493_vm3, %v523_v41  ;;  %v525_v43 = vsel %vm493_vm3, %v523_v41, 0.0  ;;  %511 = vadd.xlane.f32.xlu1 %v510_v42 }
 0x276   : > { %v526_v44 = vrot.slane %v525_v43, 4 }
 0x278   : > { %v527_v45 = vadd.f32 %v526_v44, %v525_v43 }
 0x27a   : > { %v528_v46 = vrot.slane %v527_v45, 2 }
 0x27c   : > { %v529_v47 = vadd.f32 %v528_v46, %v527_v45 }
 0x27e   : > { %v530_v48 = vrot.slane %v529_v47, 1 }
 0x280   : > { %v531_v50 = vadd.f32 %v530_v48, %v529_v47 }
 0x282   : > { %v533_v51 = vsub.f32 %v531_v50, %v532_v49 }
 0x284   : > { %v534_v52 = vmul.f32 %v533_v51, %v533_v51 }
 0x286   : > { %v536_v53 = vsel %vm535_vm5, %v534_v52, 0.0 }
 0x287   : > { %537 = vadd.xlane.f32.xlu1 %v536_v53 }
 0x2fe   : > { %v512_v54 = vpop.xlane.xlu1 %511 }
 0x2ff   : > { %v513_v55 = vrot.slane %v512_v54, 4 }
 0x301   : > { %v514_v56 = vadd.f32 %v513_v55, %v512_v54 }
 0x303   : > { %v515_v57 = vrot.slane %v514_v56, 2 }
 0x305   : > { %v516_v58 = vadd.f32 %v515_v57, %v514_v56 }
 0x307   : > { %v517_v59 = vrot.slane %v516_v58, 1 }
 0x309   : > { %v518_v60 = vadd.f32 %v517_v59, %v516_v58 }
 0x30b   : > { %964 = vpush %v518_v60 }
 0x310   : > { %v538_v61 = vpop.xlane.xlu1 %537 }
 0x311   : > { %v539_v62 = vrot.slane %v538_v61, 4 }
 0x313   : > { %v540_v63 = vadd.f32 %v539_v62, %v538_v61 }
 0x315   : > { %v541_v0 = vrot.slane %v540_v63, 2 }
 0x317   : > { %v542_v1 = vadd.f32 %v541_v0, %v540_v63 }
 0x319   : > { %v543_v2 = vrot.slane %v542_v1, 1 }
 0x31b   : > { %v544_v3 = vadd.f32 %v543_v2, %v542_v1 }
 0x31d   : > { %966 = vpush %v544_v3 }
 0x33c   : > { %s965_s15 = spop %964 }
 0x33d   : > { %s520_s16 = ssub.f32 0.0, %s965_s15 }
 0x33f   : > { %s521_s17 = smul.f32 0.125, %s520_s16 }
 0x341   : > { %549 = sst [smem:[#allocation5 + $0x1]] %s521_s17 }
 0x34e   : > { %s967_s18 = spop %966 }
 0x34f   : > { %547 = sst [smem:[#allocation5]] %s967_s18 }
 0x350 PF: > { %p550_p13 = scmp.eq.s32.totalorder %s1228_s24, 1  ;;  %p948_p2 = scmp.ne.s32.totalorder %s1228_s24, 1 }
 0x352   : > { %553 = sbr.rel (%p948_p2) target bundleno = 1331 (0x533), region = 68 }
 0x357   : > { %v554_v4 = vld [vmem:[#allocation3] sm:$0xff]  ;;  %v558_v6 = vld [vmem:[#allocation6 + $0x18] sm:$0xff]  ;;  %v555_v7 = vld [vmem:[#allocation6] sm:$0xff]  ;;  %v1244_v9 = vmov 0.0   ;;  %vm591_vm6 = vcmask 64512   ;;  %vm790_vm7 = vcmask 7168  }
 0x358   : > { %v556_v5 = vld [vmem:[#allocation6 + $0x8] sm:$0xff]  ;;  %559 = vxpose.xlu0.b32.start.end [1/1] (short) (narrow) %v554_v4, 16  ;;  %v557_v8 = vld [vmem:[#allocation6 + $0x10] sm:$0xff]  ;;  %705 = vmatprep.subr.mxu1 %v558_v6  ;;  %v752_v12 = vld [vmem:[%s1390_s14] sm:$0xff] }
 0x359   : > { %628 = vmatprep.subr.mxu0 %v556_v5  ;;  %662 = vmatprep.mubr.f32.mxu0 %v1244_v9  ;;  %v754_v15 = vld [vmem:[%s1390_s14 + $0x10] sm:$0xff]  ;;  %v753_v16 = vld [vmem:[%s1390_s14 + $0x8] sm:$0xff]  ;;  %v755_v18 = vld [vmem:[%s1390_s14 + $0x18] sm:$0xff] }
 0x35a   : > { %629 = vmatpush1.msra.mxu0 %v555_v7  ;;  %706 = vmatpush1.msra.mxu1 %v557_v8  ;;  %v756_v21 = vld [vmem:[%s1390_s14 + $0x20] sm:$0xff]  ;;  %v758_v27 = vld [vmem:[%s1390_s14 + $0x30] sm:$0xff]  ;;  %v757_v28 = vld [vmem:[%s1390_s14 + $0x28] sm:$0xff] }
 0x35b   : > { %739 = vmatprep.mubr.f32.mxu1 %v1244_v9  ;;  %v759_v34 = vld [vmem:[%s1390_s14 + $0x38] sm:$0xff]  ;;  %v768_v50 = vld [vmem:[#allocation4] sm:$0xff] }
 0x35c   : > { %v769_v53 = vld [vmem:[#allocation4 + $0x8] sm:$0xff] }
 0x3d4   : > { %v575_v10 = vpop.trf.xlu0 }
 0x3d5   : > { %949 = vmatmul.mubr.msk.f32.vlgmr.msra.gmra.mxu0 %vm591_vm6, %v575_v10  ;;  %951 = vmatmul.mubr.msk.f32.vlgmr.msra.gmra.mxu1 %vm591_vm6, %v575_v10 }
 0x3d6   : > { %668 = vmatprep.mubr.f32.mxu0 %v1244_v9  ;;  %745 = vmatprep.mubr.f32.mxu1 %v1244_v9 }
 0x3d8   : > { %v576_v11 = vpop.trf.xlu0 }
 0x3d9   : > { %950 = vmatmul.mubr.msk.f32.gmra.mxu0 %vm591_vm6, %v576_v11  ;;  %952 = vmatmul.mubr.msk.f32.gmra.mxu1 %vm591_vm6, %v576_v11 }
 0x495   : > { %v664_v13 = vpop.f32.mrf.mxu0  ;;  %v741_v14 = vpop.f32.mrf.mxu1 }
 0x496   : > { %v760_v17 = vsub.f32 %v664_v13, %v752_v12  ;;  %v762_v22 = vsub.f32 %v741_v14, %v754_v15 }
 0x497   : > { %v666_v19 = vpop.f32.mrf.mxu0  ;;  %v743_v20 = vpop.f32.mrf.mxu1 }
 0x498   : > { %v761_v23 = vsub.f32 %v666_v19, %v753_v16  ;;  %v763_v24 = vsub.f32 %v743_v20, %v755_v18  ;;  %v770_v29 = vmul.f32 %v760_v17, %v760_v17  ;;  %v772_v35 = vmul.f32 %v762_v22, %v762_v22 }
 0x499   : > { %v670_v25 = vpop.f32.mrf.mxu0  ;;  %v747_v26 = vpop.f32.mrf.mxu1 }
 0x49a   : > { %v771_v30 = vmul.f32 %v761_v23, %v761_v23  ;;  %v764_v31 = vsub.f32 %v670_v25, %v756_v21  ;;  %v766_v37 = vsub.f32 %v747_v26, %v758_v27  ;;  %v773_v39 = vmul.f32 %v763_v24, %v763_v24 }
 0x49b   : > { %v672_v32 = vpop.f32.mrf.mxu0  ;;  %v749_v33 = vpop.f32.mrf.mxu1 }
 0x49c   : > { %v778_v36 = vadd.f32 %v771_v30, %v770_v29  ;;  %v765_v38 = vsub.f32 %v672_v32, %v757_v28  ;;  %v774_v40 = vmul.f32 %v764_v31, %v764_v31  ;;  %v767_v42 = vsub.f32 %v749_v33, %v759_v34 }
 0x49d   : > { %v776_v44 = vmul.f32 %v766_v37, %v766_v37 }
 0x49e   : > { %v775_v41 = vmul.f32 %v765_v38, %v765_v38  ;;  %v779_v43 = vadd.f32 %v778_v36, %v772_v35  ;;  %v777_v47 = vmul.f32 %v767_v42, %v767_v42 }
 0x4a0   : > { %v783_v45 = vadd.f32 %v775_v41, %v774_v40  ;;  %v780_v46 = vadd.f32 %v779_v43, %v773_v39 }
 0x4a2   : > { %781 = vadd.xlane.f32.xlu0 %v780_v46  ;;  %v784_v48 = vadd.f32 %v783_v45, %v776_v44 }
 0x4a4   : > { %v785_v49 = vadd.f32 %v784_v48, %v777_v47 }
 0x4a6   : > { %786 = vadd.xlane.f32.xlu1 %v785_v49 }
 0x52b   : > { %v782_v51 = vpop.xlane.xlu0 %781 }
 0x52c   : > { %v788_v52 = vadd.f32 %v782_v51, %v768_v50 }
 0x52e   : > { %791 = vst.msk [vmem:[#allocation4] sm:$0xff] %vm790_vm7, %v788_v52 }
 0x52f   : > { %v787_v54 = vpop.xlane.xlu1 %786 }
 0x530   : > { %v789_v55 = vadd.f32 %v787_v54, %v769_v53 }
 0x532   : > { %792 = vst.msk [vmem:[#allocation4 + $0x8] sm:$0xff] %vm790_vm7, %v789_v55 }
 0x533 PF: > { %796 = sbr.rel (!%p550_p13) target bundleno = 1548 (0x60c), region = 72  ;;  %vm800_vm8 = vcmask (%p550_p13), 7168   ;;  %s954_s21 = sld [smem:[#allocation5 + $0x1]] (%p550_p13) }
 0x534   : > { %s813_s9 = sld [smem:[#allocation5]] (%p550_p13) }
 0x535   : > { %v798_v56 = vld [vmem:[#allocation4] sm:$0xff] (%p550_p13) }
 0x536   : > { %v801_v58 = vsel (%p550_p13), %vm800_vm8, %v798_v56, 0.0 }
 0x539   : > { %v799_v57 = vld [vmem:[#allocation4 + $0x8] sm:$0xff]  ;;  %821 = sst [smem:[#allocation13]] %s954_s21  ;;  %s816_s28 = smul.f32 0.0, %s954_s21 }
 0x53a   : > { %v802_v59 = vsel %vm800_vm8, %v799_v57, 0.0 }
 0x53b   : > { %v803_v60 = vadd.f32 %v802_v59, %v801_v58 }
 0x53d   : > { %804 = vadd.xlane.f32.xlu0 %v803_v60 }
 0x5c6   : > { %v805_v61 = vpop.xlane.xlu0 %804 }
 0x5c7   : > { %v806_v62 = vrot.slane %v805_v61, 4 }
 0x5c9   : > { %v807_v63 = vadd.f32 %v806_v62, %v805_v61 }
 0x5cb   : > { %v808_v0 = vrot.slane %v807_v63, 2 }
 0x5cd   : > { %v809_v1 = vadd.f32 %v808_v0, %v807_v63 }
 0x5cf   : > { %v810_v2 = vrot.slane %v809_v1, 1 }
 0x5d1   : > { %v811_v3 = vadd.f32 %v810_v2, %v809_v1 }
 0x5d3   : > { %968 = vpush %v811_v3 }
 0x604   : > { %s969_s24 = spop %968 }
 0x605   : > { %s814_s7 = sadd.f32 %s969_s24, %s813_s9 }
 0x607   : > { %s815_s0 = smul.f32 0.5, %s814_s7 }
 0x609   : > { %s817_s19 = sadd.f32 %s816_s28, %s815_s0 }
 0x60b   : > { %819 = sst [smem:[#allocation12]] %s817_s19 }
 0x60c PF: > { %p1004_p7 = scmp.eq.s32.totalorder %s1311_s27, 1  ;;  %s1245_s8 = smov [#allocation12]  }
 0x60d   : > { %s1246_s29 = smov [#allocation13]  }
 0x60e   : > { %981 = dma.smem_to_hbm (%p1004_p7), %s1245_s8, 16, %s1467_s5, [#allocation8]  }
 0x60f   : > { %983 = dma.smem_to_hbm (%p1004_p7), %s1246_s29, 16, %s1468_s6, [#allocation14]  }
 0x610   : > { %1207 = dma.done.wait (%p1004_p7), [#allocation8], 16  }
 0x611   : > { %1209 = vsyncadd (%p1004_p7), [#allocation8], 4294967280 }
 0x612   : > { %1211 = dma.done.wait (%p1004_p7), [#allocation14], 16  }
 0x613   : > { %1213 = vsyncadd (%p1004_p7), [#allocation14], 4294967280 }
 0x614   : > { %848 = sfence }
 0x615 PF: > { %s23_s26 = sadd.s32 1, %s1236_s26   ;;  %s1484_s21 = smov %s1220_s22 }
 0x616   : > { %p20_p9 = scmp.ge.s32.totalorder %s23_s26, 4   ;;  %s1485_s22 = smov %s1224_s23 }
 0x617   : > { %s1486_s23 = smov %s1376_s12  ;;  %s1487_s24 = smov %s1232_s25 }
 0x618   : > { %s1488_s25 = smov %s1490_s20  ;;  %22 = sbr.rel (!%p20_p9) target bundleno = 9 (0x9), region = 119 }
 0x61d   :  { %854 = vsyncpa [#allocation7], 1 }
 0x61e   :  { %856 = vsyncpa [#allocation7 + $0x1], 1 }
 0x61f   :  { %857 = vsyncpa [#allocation10], 1 }
 0x620   :  { %859 = vsyncpa [#allocation10 + $0x1], 1 }
 0x621   :  { %860 = vsyncpa [#allocation8], 1 }
 0x622   :  { %862 = vsyncpa [#allocation8 + $0x1], 1 }
 0x623   :  { %863 = vsyncpa [#allocation14], 1 }

</bundles_post_ra>
